<compile_context>
chip_gen: v6e
topology: v6e:2x2x1
jax: 0.10.0
libtpu: 0.0.40
codegen_flags: <defaults>
</compile_context>

<pallas_src>
import functools

import jax
import jax.numpy as jnp
from jax.experimental import pallas as pl
from jax.experimental.pallas import tpu as pltpu

LANES = 128
SUBLANES = 8
TM_ROWS = 2048  # rows per input block: 2048 * 128 * 4B = 1 MiB per f32 input


def _dice_partial_kernel(logits_ref, targets_ref, out_ref, *, tm, steps_per_core,
                         n_valid):
    """Accumulate per-lane partial sums [p*t ; p ; t] into a (24, 128) block."""
    c = pl.program_id(0)   # core split (parallel)
    j = pl.program_id(1)   # row-block loop (arbitrary / reduction)

    @pl.when(j == 0)
    def _():
        out_ref[...] = jnp.zeros_like(out_ref)

    # Global block index (unclamped) -> element-index mask for the tail and for
    # out-of-range blocks (the index_map clamps the DMA; the mask zeroes it).
    bi = c * steps_per_core + j
    row0 = bi * tm
    row_idx = jax.lax.broadcasted_iota(jnp.int32, (tm, LANES), 0) + row0
    col_idx = jax.lax.broadcasted_iota(jnp.int32, (tm, LANES), 1)
    mask = (row_idx * LANES + col_idx) < n_valid

    x = logits_ref[...].astype(jnp.float32)
    t = targets_ref[...].astype(jnp.float32)
    p = jax.nn.sigmoid(x)
    p = jnp.where(mask, p, 0.0)
    t = jnp.where(mask, t, 0.0)
    pt = p * t

    # Reduce the (tm, 128) tile to (8, 128) with pure VPU adds (tile-aligned
    # reshape, no cross-lane work per step).
    sub = tm // SUBLANES
    out_ref[0:8, :] += pt.reshape(sub, SUBLANES, LANES).sum(axis=0)
    out_ref[8:16, :] += p.reshape(sub, SUBLANES, LANES).sum(axis=0)
    out_ref[16:24, :] += t.reshape(sub, SUBLANES, LANES).sum(axis=0)


def dice_loss(logits: jax.Array, targets: jax.Array, eps: float = 1e-9) -> jax.Array:
    assert logits.shape == targets.shape
    n_valid = int(logits.size)

    # Flatten; pad (only if needed) to a multiple of 8*128 so the slab is
    # (rows, 128) with rows % 8 == 0.  Pad values are irrelevant (masked).
    pad = (-n_valid) % (SUBLANES * LANES)
    lf = logits.reshape(-1)
    tf = targets.reshape(-1)
    if pad:
        lf = jnp.pad(lf, (0, pad))
        tf = jnp.pad(tf, (0, pad))
    rows = lf.size // LANES
    lf = lf.reshape(rows, LANES)
    tf = tf.reshape(rows, LANES)

    tm = min(TM_ROWS, rows)                 # multiple of 8 (or the full dim)
    total_blocks = pl.cdiv(rows, tm)
    ncores = min(2, total_blocks)           # 2-way TensorCore split on v7x
    steps_per_core = pl.cdiv(total_blocks, ncores)

    def in_index_map(c, j):
        bi = c * steps_per_core + j
        return (jnp.minimum(bi, total_blocks - 1), 0)

    kernel = functools.partial(
        _dice_partial_kernel, tm=tm, steps_per_core=steps_per_core, n_valid=n_valid)

    partials = pl.pallas_call(
        kernel,
        out_shape=jax.ShapeDtypeStruct((ncores, 3 * SUBLANES, LANES), jnp.float32),
        grid=(ncores, steps_per_core),
        in_specs=[
            pl.BlockSpec((tm, LANES), in_index_map),
            pl.BlockSpec((tm, LANES), in_index_map),
        ],
        out_specs=pl.BlockSpec((None, 3 * SUBLANES, LANES), lambda c, j: (c, 0, 0)),
        compiler_params=pltpu.CompilerParams(
            dimension_semantics=("parallel", "arbitrary"),
        ),
    )(lf, tf)

    # Tiny finalize outside the kernel: one cross-lane reduce + the divide.
    sums = partials.reshape(ncores, 3, SUBLANES, LANES).sum(axis=(0, 2, 3))
    intersection = 2.0 * sums[0]
    union = sums[1] + sums[2]
    # Note: eps is added to the numerator only, exactly matching the PyTorch
    # reference (union == 0 would give inf/NaN there too).
    dice = (intersection + eps) / union
    return 1.0 - dice


def _dice_loss_ref(logits, targets, eps=1e-9):
    p = jax.nn.sigmoid(logits.astype(jnp.float32)).reshape(-1)
    t = targets.astype(jnp.float32).reshape(-1)
    intersection = 2.0 * jnp.sum(p * t)
    union = jnp.sum(p) + jnp.sum(t)
    return 1.0 - (intersection + eps) / union


if __name__ == "__main__":
    key = jax.random.PRNGKey(0)
    k1, k2 = jax.random.split(key)
    shape = (2, 4, 16, 16)  # NCHW, like the PyTorch module's inputs
    logits = jax.random.normal(k1, shape, dtype=jnp.float32)
    targets = (jax.random.uniform(k2, shape) > 0.5).astype(jnp.float32)

    loss = dice_loss(logits, targets)
    jax.block_until_ready(loss)

    ref = _dice_loss_ref(logits, targets)
    assert jnp.allclose(loss, ref, rtol=1e-5, atol=1e-6), (loss, ref)
    print("KERNEL_OK")
</pallas_src>

<mosaic_0001>
module attributes {stable_mosaic.version = 11 : i64} {
  func.func @_dice_partial_kernel(%arg0: i32, %arg1: i32, %arg2: memref<16x128xf32, #tpu.memory_space<vmem>>, %arg3: memref<16x128xf32, #tpu.memory_space<vmem>>, %arg4: memref<1x24x128xf32, #tpu.memory_space<vmem>>) attributes {dimension_semantics = [#tpu.dimension_semantics<parallel>, #tpu.dimension_semantics<arbitrary>], iteration_bounds = array<i64: 1, 1>, scalar_prefetch = 0 : i64, scratch_operands = 0 : i64, tpu.core_type = #tpu.core_type<tc>, window_params = [{transform_indices = @transform_0, window_bounds = array<i64: 16, 128>}, {transform_indices = @transform_1, window_bounds = array<i64: 16, 128>}, {transform_indices = @transform_2, window_bounds = array<i64: 1, 24, 128>}]} {
    %c0_i32 = arith.constant 0 : i32
    %0 = arith.cmpi eq, %arg1, %c0_i32 : i32
    %1 = arith.extui %0 : i1 to i32
    %c0_i32_0 = arith.constant 0 : i32
    %2 = arith.cmpi ne, %1, %c0_i32_0 : i32
    scf.if %2 {
      %cst_25 = arith.constant 0.000000e+00 : f32
      %51 = vector.broadcast %cst_25 : f32 to vector<24x128xf32>
      %c0_26 = arith.constant 0 : index
      %c0_27 = arith.constant 0 : index
      %c0_28 = arith.constant 0 : index
      %52 = vector.load %arg4[%c0_26, %c0_27, %c0_28] : memref<1x24x128xf32, #tpu.memory_space<vmem>>, vector<1x24x128xf32>
      %53 = vector.shape_cast %52 : vector<1x24x128xf32> to vector<24x128xf32>
      %54 = vector.shape_cast %51 : vector<24x128xf32> to vector<1x24x128xf32>
      tpu.vector_store %arg4[%c0_26, %c0_27, %c0_28], %54 {strides = array<i32>} : memref<1x24x128xf32, #tpu.memory_space<vmem>>, vector<1x24x128xf32>,
    } else {
    }
    %c1_i32 = arith.constant 1 : i32
    %3 = arith.muli %arg0, %c1_i32 : i32
    %4 = arith.addi %3, %arg1 : i32
    %c16_i32 = arith.constant 16 : i32
    %5 = arith.muli %4, %c16_i32 : i32
    %6 = tpu.iota {dimensions = array<i32: 0>} : vector<16x128xi32>
    %7 = vector.broadcast %5 : i32 to vector<16x128xi32>
    %8 = arith.addi %6, %7 : vector<16x128xi32>
    %9 = tpu.iota {dimensions = array<i32: 1>} : vector<16x128xi32>
    %c128_i32 = arith.constant 128 : i32
    %10 = vector.broadcast %c128_i32 : i32 to vector<16x128xi32>
    %11 = arith.muli %8, %10 : vector<16x128xi32>
    %12 = arith.addi %11, %9 : vector<16x128xi32>
    %c2048_i32 = arith.constant 2048 : i32
    %13 = vector.broadcast %c2048_i32 : i32 to vector<16x128xi32>
    %14 = arith.cmpi slt, %12, %13 : vector<16x128xi32>
    %c0 = arith.constant 0 : index
    %c0_1 = arith.constant 0 : index
    %15 = vector.load %arg2[%c0, %c0_1] : memref<16x128xf32, #tpu.memory_space<vmem>>, vector<16x128xf32>
    %c0_2 = arith.constant 0 : index
    %c0_3 = arith.constant 0 : index
    %16 = vector.load %arg3[%c0_2, %c0_3] : memref<16x128xf32, #tpu.memory_space<vmem>>, vector<16x128xf32>
    %17 = arith.negf %15 : vector<16x128xf32>
    %18 = math.exp %17 : vector<16x128xf32>
    %cst = arith.constant 1.000000e+00 : f32
    %19 = vector.broadcast %cst : f32 to vector<16x128xf32>
    %20 = arith.addf %19, %18 : vector<16x128xf32>
    %21 = arith.divf %19, %20 : vector<16x128xf32>
    %cst_4 = arith.constant 0.000000e+00 : f32
    %22 = vector.broadcast %cst_4 : f32 to vector<16x128xf32>
    %23 = arith.select %14, %21, %22 : vector<16x128xi1>, vector<16x128xf32>
    %cst_5 = arith.constant 0.000000e+00 : f32
    %24 = vector.broadcast %cst_5 : f32 to vector<16x128xf32>
    %25 = arith.select %14, %16, %24 : vector<16x128xi1>, vector<16x128xf32>
    %26 = arith.mulf %23, %25 : vector<16x128xf32>
    %c0_6 = arith.constant 0 : index
    %c0_7 = arith.constant 0 : index
    %c0_8 = arith.constant 0 : index
    %27 = vector.load %arg4[%c0_6, %c0_7, %c0_8] : memref<1x24x128xf32, #tpu.memory_space<vmem>>, vector<1x8x128xf32>
    %28 = vector.shape_cast %27 : vector<1x8x128xf32> to vector<8x128xf32>
    %29 = vector.shape_cast %26 : vector<16x128xf32> to vector<2x8x128xf32>
    %cst_9 = arith.constant dense<0.000000e+00> : vector<8x128xf32>
    %30 = vector.multi_reduction <add>, %29, %cst_9 [0] : vector<2x8x128xf32> to vector<8x128xf32>
    %31 = arith.addf %28, %30 : vector<8x128xf32>
    %c0_10 = arith.constant 0 : index
    %c0_11 = arith.constant 0 : index
    %c0_12 = arith.constant 0 : index
    %32 = vector.load %arg4[%c0_10, %c0_11, %c0_12] : memref<1x24x128xf32, #tpu.memory_space<vmem>>, vector<1x8x128xf32>
    %33 = vector.shape_cast %32 : vector<1x8x128xf32> to vector<8x128xf32>
    %34 = vector.shape_cast %31 : vector<8x128xf32> to vector<1x8x128xf32>
    tpu.vector_store %arg4[%c0_10, %c0_11, %c0_12], %34 {strides = array<i32>} : memref<1x24x128xf32, #tpu.memory_space<vmem>>, vector<1x8x128xf32>,
    %c0_13 = arith.constant 0 : index
    %c8 = arith.constant 8 : index
    %c0_14 = arith.constant 0 : index
    %35 = vector.load %arg4[%c0_13, %c8, %c0_14] : memref<1x24x128xf32, #tpu.memory_space<vmem>>, vector<1x8x128xf32>
    %36 = vector.shape_cast %35 : vector<1x8x128xf32> to vector<8x128xf32>
    %37 = vector.shape_cast %23 : vector<16x128xf32> to vector<2x8x128xf32>
    %cst_15 = arith.constant dense<0.000000e+00> : vector<8x128xf32>
    %38 = vector.multi_reduction <add>, %37, %cst_15 [0] : vector<2x8x128xf32> to vector<8x128xf32>
    %39 = arith.addf %36, %38 : vector<8x128xf32>
    %c0_16 = arith.constant 0 : index
    %c8_17 = arith.constant 8 : index
    %c0_18 = arith.constant 0 : index
    %40 = vector.load %arg4[%c0_16, %c8_17, %c0_18] : memref<1x24x128xf32, #tpu.memory_space<vmem>>, vector<1x8x128xf32>
    %41 = vector.shape_cast %40 : vector<1x8x128xf32> to vector<8x128xf32>
    %42 = vector.shape_cast %39 : vector<8x128xf32> to vector<1x8x128xf32>
    tpu.vector_store %arg4[%c0_16, %c8_17, %c0_18], %42 {strides = array<i32>} : memref<1x24x128xf32, #tpu.memory_space<vmem>>, vector<1x8x128xf32>,
    %c0_19 = arith.constant 0 : index
    %c16 = arith.constant 16 : index
    %c0_20 = arith.constant 0 : index
    %43 = vector.load %arg4[%c0_19, %c16, %c0_20] : memref<1x24x128xf32, #tpu.memory_space<vmem>>, vector<1x8x128xf32>
    %44 = vector.shape_cast %43 : vector<1x8x128xf32> to vector<8x128xf32>
    %45 = vector.shape_cast %25 : vector<16x128xf32> to vector<2x8x128xf32>
    %cst_21 = arith.constant dense<0.000000e+00> : vector<8x128xf32>
    %46 = vector.multi_reduction <add>, %45, %cst_21 [0] : vector<2x8x128xf32> to vector<8x128xf32>
    %47 = arith.addf %44, %46 : vector<8x128xf32>
    %c0_22 = arith.constant 0 : index
    %c16_23 = arith.constant 16 : index
    %c0_24 = arith.constant 0 : index
    %48 = vector.load %arg4[%c0_22, %c16_23, %c0_24] : memref<1x24x128xf32, #tpu.memory_space<vmem>>, vector<1x8x128xf32>
    %49 = vector.shape_cast %48 : vector<1x8x128xf32> to vector<8x128xf32>
    %50 = vector.shape_cast %47 : vector<8x128xf32> to vector<1x8x128xf32>
    tpu.vector_store %arg4[%c0_22, %c16_23, %c0_24], %50 {strides = array<i32>} : memref<1x24x128xf32, #tpu.memory_space<vmem>>, vector<1x8x128xf32>,
    return
  }
  func.func @transform_0(%arg0: i32, %arg1: i32) -> (i32, i32) {
    %c1_i32 = arith.constant 1 : i32
    %0 = arith.muli %arg0, %c1_i32 : i32
    %1 = arith.addi %0, %arg1 : i32
    %c0_i32 = arith.constant 0 : i32
    %2 = arith.minsi %1, %c0_i32 : i32
    %c0_i32_0 = arith.constant 0 : i32
    %c0_i32_1 = arith.constant 0 : i32
    return %2, %c0_i32_0 : i32, i32
  }
  func.func @transform_1(%arg0: i32, %arg1: i32) -> (i32, i32) {
    %c1_i32 = arith.constant 1 : i32
    %0 = arith.muli %arg0, %c1_i32 : i32
    %1 = arith.addi %0, %arg1 : i32
    %c0_i32 = arith.constant 0 : i32
    %2 = arith.minsi %1, %c0_i32 : i32
    %c0_i32_0 = arith.constant 0 : i32
    %c0_i32_1 = arith.constant 0 : i32
    return %2, %c0_i32_0 : i32, i32
  }
  func.func @transform_2(%arg0: i32, %arg1: i32) -> (i32, i32, i32) {
    %c0_i32 = arith.constant 0 : i32
    %c0_i32_0 = arith.constant 0 : i32
    %c0_i32_1 = arith.constant 0 : i32
    return %arg0, %c0_i32, %c0_i32_0 : i32, i32, i32
  }
}

</mosaic_0001>

<bundles_post_ra>
// kernel: tpu_custom_call.1
= control target key start
LH: loop header
LB: loop body
LE: loop exit
PB: predicated region body
PF: predicated region fallthrough
CT: control target
= control target key end

     0   :  { %7 = vsyncpa [#allocation3], 0  ;;  %s263_s0 = inlined_call_operand.hbm [shape: f32[16,128], index: 0, kind: input, shape index: {}]   ;;  %s264_s1 = inlined_call_operand.hbm [shape: f32[16,128], index: 1, kind: input, shape index: {}]   ;;  %s265_s2 = inlined_call_operand.hbm [shape: f32[1,24,128], index: 2, kind: output, shape index: {}]  }
   0x1   :  { %8 = vsyncpa [#allocation6], 0 }
   0x2   :  { %9 = vsyncpa [#allocation4], 0  ;;  %s221_s9 = smov [#allocation2]  }
   0x3   :  { %s21_s10 = sshll.u32 %s221_s9, 4  ;;  %s22_s10 = int_to_ptr.vmem [resolvable:$true] %s21_s10 }
   0x4   :  { %s163_s11 = scalar_lea.vmem %s22_s10, 256  ;;  %p168_p1 = scmp.lt.s32.totalorder %s22_s10, %s22_s10 }
   0x5   :  { %p164_p0 = scmp.ne.s32.totalorder %s22_s10, %s163_s11  ;;  %p169_p2 = scmp.lt.s32.totalorder %s163_s11, %s163_s11 }
   0x7   :  { %p170_p3 = por %p169_p2, %p168_p1 }
   0x9   :  { %p171_p4 = pnand %p170_p3, %p164_p0 }
   0xb   :  { %174 = shalt.err (!%p171_p4)
}
   0xc   :  { %s222_s12 = smov 128   ;;  %s223_s13 = smov 8  }
   0xd   :  { %27 = dma.hbm_to_vmem [thread:$0]  %s263_s0, 256, %s22_s10, [#allocation3], %s222_s12, %s222_s12, %s223_s13  }
   0xe   :  { %s224_s16 = smov [#allocation5]  }
   0xf   :  { %s39_s17 = sshll.u32 %s224_s16, 4  ;;  %s40_s17 = int_to_ptr.vmem [resolvable:$true] %s39_s17 }
  0x10   :  { %s183_s18 = scalar_lea.vmem %s40_s17, 256  ;;  %p188_p6 = scmp.lt.s32.totalorder %s40_s17, %s40_s17 }
  0x11   :  { %p184_p5 = scmp.ne.s32.totalorder %s40_s17, %s183_s18  ;;  %p189_p7 = scmp.lt.s32.totalorder %s183_s18, %s183_s18 }
  0x13   :  { %p190_p8 = por %p189_p7, %p188_p6 }
  0x15   :  { %p191_p9 = pnand %p190_p8, %p184_p5 }
  0x17   :  { %194 = shalt.err (!%p191_p9)
}
  0x18   :  { %45 = dma.hbm_to_vmem [thread:$0]  %s264_s1, 256, %s40_s17, [#allocation6], %s222_s12, %s222_s12, %s223_s13  }
  0x19   :  { %215 = dma.done.wait [#allocation3], 256  }
  0x1a   :  { %216 = vsyncadd [#allocation3], 4294967040 }
  0x1b   :  { %217 = dma.done.wait [#allocation6], 256  }
  0x1c   :  { %218 = vsyncadd [#allocation6], 4294967040  ;;  %v69_v0 = vlaneseq  ;;  %v83_v7 = vld [vmem:[#allocation2] sm:$0xff]  ;;  %v84_v8 = vld [vmem:[#allocation2 + $0x8] sm:$0xff]  ;;  %s225_s0 = smov [#allocation7]  }
  0x1d   :  { %v85_v9 = vld [vmem:[#allocation5] sm:$0xff]  ;;  %v86_v11 = vld [vmem:[#allocation5 + $0x8] sm:$0xff]  ;;  %v139_v12 = vmul.f32 -1.442695, %v83_v7  ;;  %v140_v13 = vmul.f32 -1.442695, %v84_v8 }
  0x1e   :  { %v70_v1 = vshrl.u32 %v69_v0, 7  ;;  %v76_v2 = vand.u32 127, %v69_v0  ;;  %s122_s1 = sshll.u32 %s225_s0, 4  ;;  %s123_s1 = int_to_ptr.vmem [resolvable:$true] %s122_s1 }
  0x1f   :  { %147 = vpow2.f32 %v139_v12  ;;  %s195_s21 = scalar_lea.vmem %s123_s1, 384  ;;  %p200_p11 = scmp.lt.s32.totalorder %s123_s1, %s123_s1 }
  0x20   :  { %v71_v3 = vadd.s32 8, %v70_v1  ;;  %v77_v4 = vmul.u32 128, %v70_v1  ;;  %149 = vpow2.f32 %v140_v13  ;;  %p196_p10 = scmp.ne.s32.totalorder %s123_s1, %s195_s21  ;;  %p201_p12 = scmp.lt.s32.totalorder %s195_s21, %s195_s21 }
  0x22   :  { %v78_v5 = vmul.u32 128, %v71_v3  ;;  %v79_v6 = vadd.s32 %v77_v4, %v76_v2  ;;  %p202_p13 = por %p201_p12, %p200_p11 }
  0x24   :  { %v80_v10 = vadd.s32 %v78_v5, %v76_v2  ;;  %vm81_vm0 = vcmp.lt.s32.totalorder %v79_v6, 2048  ;;  %p203_p0 = pnand %p202_p13, %p196_p10 }
  0x25   :  { %v101_v14 = vsel %vm81_vm0, %v85_v9, 0.0 }
  0x26   :  { %vm82_vm1 = vcmp.lt.s32.totalorder %v80_v10, 2048 }
  0x27   :  { %v102_v15 = vsel %vm82_vm1, %v86_v11, 0.0 }
  0x28   :  { %v114_v16 = vadd.f32 %v102_v15, %v101_v14 }
  0x2a   :  { %116 = vst [vmem:[#allocation7 + $0x10] sm:$0xff] %v114_v16 }
  0x2c   :  { %v148_v17 = vpop.eup %147 }
  0x2d   :  { %v150_v18 = vpop.eup %149  ;;  %v93_v19 = vadd.f32 1.0, %v148_v17 }
  0x2e   :  { %v94_v20 = vadd.f32 1.0, %v150_v18 }
  0x2f   :  { %151 = vrcp.f32 %v93_v19 }
  0x30   :  { %153 = vrcp.f32 %v94_v20 }
  0x3c   :  { %v152_v21 = vpop.eup %151 }
  0x3d   :  { %v154_v22 = vpop.eup %153  ;;  %v99_v23 = vsel %vm81_vm0, %v152_v21, 0.0 }
  0x3e   :  { %v100_v24 = vsel %vm82_vm1, %v154_v22, 0.0  ;;  %v103_v25 = vmul.f32 %v101_v14, %v99_v23 }
  0x3f   :  { %v104_v26 = vmul.f32 %v102_v15, %v100_v24  ;;  %v110_v27 = vadd.f32 %v100_v24, %v99_v23 }
  0x41   :  { %v106_v28 = vadd.f32 %v104_v26, %v103_v25  ;;  %112 = vst [vmem:[#allocation7 + $0x8] sm:$0xff] %v110_v27 }
  0x43   :  { %108 = vst [vmem:[#allocation7] sm:$0xff] %v106_v28 }
  0x44   :  { %206 = shalt.err (!%p203_p0)
}
  0x45   :  { %128 = dma.vmem_to_hbm [thread:$0]  %s123_s1, 384, %s265_s2, [#allocation4], %s222_s12, %s222_s12, %s223_s13  }
  0x46   :  { %219 = dma.done.wait [#allocation4], 384  }
  0x47   :  { %220 = vsyncadd [#allocation4], 4294966912 }
  0x48   :  { %132 = vsyncpa [#allocation3], 1 }
  0x49   :  { %133 = vsyncpa [#allocation6], 1 }
  0x4a   :  { %134 = vsyncpa [#allocation4], 1 }

</bundles_post_ra>
